<compile_context>
chip_gen: v7x
topology: tpu7x:2x2x1
jax: 0.10.0
libtpu: 0.0.40
codegen_flags: <defaults>
</compile_context>

<pallas_src>
import functools

import numpy as np
import jax
import jax.numpy as jnp
from jax.experimental import pallas as pl
from jax.experimental.pallas import tpu as pltpu

BN_EPS = 1e-5
_TAPS = tuple((dy, dx) for dy in range(3) for dx in range(3))


def _prediction_kernel(x_ref, mask_ref, w1_ref, gamma_ref, beta_ref,
                       w2_ref, fcw_ref, fcb_ref, out_ref, *, B, H, W):
    """Fused conv1 -> BN(train) -> ReLU -> conv2 -> FC in a lane-dense (C, N) layout.

    x_ref    : (Cin, N) f32     input, N = B*H*W flattened as n = b*H*W + h*W + w
    mask_ref : (9, N)   f32     per-tap border mask (0 where the tap reads zero padding)
    w1_ref   : (9, C1, Cin) bf16  conv1 weight, w1[t, c1, cin] = W1[c1, cin, dy, dx]
    gamma_ref, beta_ref : (C1, 1) f32
    w2_ref   : (9, C2, C1)  bf16
    fcw_ref  : (C2, HW, A+1) bf16  fc weight, fcw[c2, p, a] = W_fc[a, c2*HW + p]
    fcb_ref  : (1, A+1) f32
    out_ref  : (B, A+1) f32     logits
    """
    Cin, N = x_ref.shape
    C2 = w2_ref.shape[1]
    HW = H * W
    inv_n = 1.0 / N

    mask = mask_ref[...]                                        # (9, N) f32

    def conv3x3(inp, w_ref):
        # inp: (C, N) f32 ; w_ref: (9, Cout, C) bf16 -> (Cout, N) f32
        acc = None
        for t, (dy, dx) in enumerate(_TAPS):
            shift = (-((dy - 1) * W + (dx - 1))) % N
            # Tap assembly on the XLU roll slot: no im2col scratch, no relayout copies.
            tap = inp if shift == 0 else pltpu.roll(inp, shift, axis=1)
            if (dy, dx) != (1, 1):
                tap = tap * mask[t:t + 1, :]                    # zero the padded border
            part = jnp.dot(w_ref[t], tap.astype(jnp.bfloat16),
                           preferred_element_type=jnp.float32)  # (Cout, N) f32
            acc = part if acc is None else acc + part
        return acc

    # --- conv1 + BatchNorm2d (training-mode batch stats, two-pass var) + ReLU ---
    acc1 = conv3x3(x_ref[...], w1_ref)                          # (C1, N) f32
    mu = jnp.sum(acc1, axis=1, keepdims=True) * inv_n           # XLU lane reduce
    xc = acc1 - mu
    var = jnp.sum(xc * xc, axis=1, keepdims=True) * inv_n
    scale = gamma_ref[...] * jax.lax.rsqrt(var + BN_EPS)        # (C1, 1)
    y1 = jnp.maximum(xc * scale + beta_ref[...], 0.0)           # (C1, N)

    # --- conv2 ---
    acc2 = conv3x3(y1, w2_ref)                                  # (C2, N) f32

    # --- fully-connected head ---
    # logits[b, a] = sum_{c2, p} acc2[c2, b*HW + p] * fcw[c2, p, a] + fcb[a]
    # The FC weight is NOT batch-replicated; index per-batch lane windows of acc2.
    for b in range(B):
        row = fcb_ref[...]                                      # (1, A+1) f32
        for c in range(C2):
            feat = acc2[c:c + 1, b * HW:(b + 1) * HW]           # (1, HW) static lane window
            row = row + jnp.dot(feat.astype(jnp.bfloat16), fcw_ref[c],
                                preferred_element_type=jnp.float32)
        out_ref[b:b + 1, :] = row


def make_tap_masks(batch, H, W):
    """Host-precomputed 0/1 border masks, one (N,)-row per 3x3 tap (N = batch*H*W)."""
    m = np.zeros((9, batch, H, W), np.float32)
    for dy in range(3):
        for dx in range(3):
            t = dy * 3 + dx
            m[t, :, max(0, 1 - dy):min(H, H - dy + 1),
                    max(0, 1 - dx):min(W, W - dx + 1)] = 1.0
    return jnp.asarray(m.reshape(9, batch * H * W))


def prepare_params(params, shape):
    """One-time conversion of torch-layout parameters into kernel layouts (bf16 MXU feeds).

    Hoisted out of the per-forward path; no batch size is baked in.
    """
    H, W = shape
    HW = H * W
    w1 = params["conv1_w"]          # (C1, Cin, 3, 3)  OIHW
    w2 = params["conv2_w"]          # (C2, C1, 3, 3)
    C1, Cin = int(w1.shape[0]), int(w1.shape[1])
    C2 = int(w2.shape[0])
    fc_w = params["fc_w"]           # (A+1, C2*H*W)  torch nn.Linear layout
    A1 = int(fc_w.shape[0])

    # Per-tap conv weights: w[t, cout, cin] = W[cout, cin, dy, dx], t = dy*3 + dx.
    w1_k = jnp.transpose(w1, (2, 3, 0, 1)).reshape(9, C1, Cin).astype(jnp.bfloat16)
    w2_k = jnp.transpose(w2, (2, 3, 0, 1)).reshape(9, C2, C1).astype(jnp.bfloat16)
    # FC weight in (c2, p, a) order; NOT replicated across the batch.
    fcw = jnp.transpose(fc_w.reshape(A1, C2, HW), (1, 2, 0)).astype(jnp.bfloat16)

    return dict(
        w1=w1_k, w2=w2_k,
        gamma=params["bn_gamma"].reshape(C1, 1).astype(jnp.float32),
        beta=params["bn_beta"].reshape(C1, 1).astype(jnp.float32),
        fcw=fcw,
        fcb=params["fc_b"].reshape(1, A1).astype(jnp.float32),
    )


def prediction_forward(x_nchw, kparams, masks, action_space):
    """Pallas implementation of PredictionNetwork.forward (NCHW input, like torch)."""
    B, Cin, H, W = x_nchw.shape
    A = action_space
    N = B * H * W

    # Only per-call glue: NCHW -> (Cin, B*H*W) so N sits on the 128-lane axis.
    x_t = jnp.transpose(x_nchw, (1, 0, 2, 3)).reshape(Cin, N).astype(jnp.float32)

    # NOTE(v7x): when B scales up, add a batch grid axis with
    # dimension_semantics=("parallel",) to use both TensorCores; weights/masks keep
    # constant index maps (no per-step growth in DMA) and each block's N window stays
    # lane-dense.  Re-derive block sizes against the 64 MiB v7x VMEM.
    logits = pl.pallas_call(
        functools.partial(_prediction_kernel, B=B, H=H, W=W),
        out_shape=jax.ShapeDtypeStruct((B, A + 1), jnp.float32),
        in_specs=[pl.BlockSpec(memory_space=pltpu.MemorySpace.VMEM)] * 8,
        out_specs=pl.BlockSpec(memory_space=pltpu.MemorySpace.VMEM),
    )(x_t, masks, kparams["w1"], kparams["gamma"], kparams["beta"],
      kparams["w2"], kparams["fcw"], kparams["fcb"])

    return logits[:, :A], logits[:, A:A + 1]


def init_params(key, shape, in_channels, reduction_coeff, action_space):
    """Deterministic synthetic parameters matching the PyTorch __init__ shapes."""
    H, W = shape
    C1 = in_channels // reduction_coeff
    C2 = in_channels // (reduction_coeff * 2)
    k1, k2, k3, k4 = jax.random.split(key, 4)
    # kaiming_normal_(mode='fan_out', nonlinearity='relu'): std = sqrt(2 / (Cout*k*k))
    w1 = jax.random.normal(k1, (C1, in_channels, 3, 3), jnp.float32) * np.sqrt(2.0 / (C1 * 9))
    w2 = jax.random.normal(k2, (C2, C1, 3, 3), jnp.float32) * np.sqrt(2.0 / (C2 * 9))
    fan_in = (H * W * in_channels) // (reduction_coeff * 2)
    bound = 1.0 / np.sqrt(fan_in)  # nn.Linear default init
    fc_w = jax.random.uniform(k3, (action_space + 1, fan_in), jnp.float32, -bound, bound)
    fc_b = jax.random.uniform(k4, (action_space + 1,), jnp.float32, -bound, bound)
    return dict(
        conv1_w=w1, conv2_w=w2,
        bn_gamma=jnp.ones((C1,), jnp.float32),   # nn.init.constant_(weight, 1)
        bn_beta=jnp.zeros((C1,), jnp.float32),   # nn.init.constant_(bias, 0)
        fc_w=fc_w, fc_b=fc_b,
    )


def reference_forward(x, params, action_space):
    """Pure-JAX (XLA) reference for numerical verification."""
    dn = ("NCHW", "OIHW", "NCHW")
    hi = jax.lax.Precision.HIGHEST
    y = jax.lax.conv_general_dilated(x, params["conv1_w"], (1, 1), ((1, 1), (1, 1)),
                                     dimension_numbers=dn, precision=hi)
    mu = jnp.mean(y, axis=(0, 2, 3), keepdims=True)
    var = jnp.mean((y - mu) ** 2, axis=(0, 2, 3), keepdims=True)
    y = (y - mu) / jnp.sqrt(var + BN_EPS)
    y = y * params["bn_gamma"].reshape(1, -1, 1, 1) + params["bn_beta"].reshape(1, -1, 1, 1)
    y = jnp.maximum(y, 0.0)
    y = jax.lax.conv_general_dilated(y, params["conv2_w"], (1, 1), ((1, 1), (1, 1)),
                                     dimension_numbers=dn, precision=hi)
    feat = y.reshape(y.shape[0], -1)
    logits = feat @ params["fc_w"].T + params["fc_b"]
    return logits[:, :action_space], logits[:, action_space:action_space + 1]


if __name__ == "__main__":
    # Small shapes consistent with the module: shape=(8,8), in_channels=8,
    # reduction_coeff=2 (C1=4, C2=2), action_space=6, batch=2 -> N = B*H*W = 128 lanes.
    B, Cin, H, W = 2, 8, 8, 8
    rc, A = 2, 6

    key = jax.random.PRNGKey(0)
    kx, kp = jax.random.split(key)
    x = jax.random.normal(kx, (B, Cin, H, W), jnp.float32)   # NCHW like PyTorch
    params = init_params(kp, shape=(H, W), in_channels=Cin,
                         reduction_coeff=rc, action_space=A)

    # One-time layout preparation (no batch size baked in) + compile-time tap masks.
    kparams = prepare_params(params, shape=(H, W))
    masks = make_tap_masks(B, H, W)

    fwd = jax.jit(functools.partial(prediction_forward, kparams=kparams,
                                    masks=masks, action_space=A))
    policy, value = fwd(x)
    jax.block_until_ready((policy, value))

    assert policy.shape == (B, A) and value.shape == (B, 1)

    p_ref, v_ref = reference_forward(x, params, A)
    # bf16 MXU feeds with f32 accumulation: expect ~1e-2 level agreement.
    assert np.allclose(np.asarray(policy), np.asarray(p_ref), rtol=2e-2, atol=3e-2), (
        float(np.max(np.abs(np.asarray(policy) - np.asarray(p_ref)))))
    assert np.allclose(np.asarray(value), np.asarray(v_ref), rtol=2e-2, atol=3e-2), (
        float(np.max(np.abs(np.asarray(value) - np.asarray(v_ref)))))

    print("KERNEL_OK")
</pallas_src>

<mosaic_0001>
module attributes {stable_mosaic.version = 11 : i64} {
  func.func @_prediction_kernel(%arg0: memref<8x128xf32, #tpu.memory_space<vmem>>, %arg1: memref<9x128xf32, #tpu.memory_space<vmem>>, %arg2: memref<9x4x8xbf16, #tpu.memory_space<vmem>>, %arg3: memref<4x1xf32, #tpu.memory_space<vmem>>, %arg4: memref<4x1xf32, #tpu.memory_space<vmem>>, %arg5: memref<9x2x4xbf16, #tpu.memory_space<vmem>>, %arg6: memref<2x64x7xbf16, #tpu.memory_space<vmem>>, %arg7: memref<1x7xf32, #tpu.memory_space<vmem>>, %arg8: memref<2x7xf32, #tpu.memory_space<vmem>>) attributes {dimension_semantics = [], scalar_prefetch = 0 : i64, scratch_operands = 0 : i64, tpu.core_type = #tpu.core_type<tc>} {
    %c0 = arith.constant 0 : index
    %c0_0 = arith.constant 0 : index
    %0 = vector.load %arg1[%c0, %c0_0] : memref<9x128xf32, #tpu.memory_space<vmem>>, vector<9x128xf32>
    %c0_1 = arith.constant 0 : index
    %c0_2 = arith.constant 0 : index
    %1 = vector.load %arg0[%c0_1, %c0_2] : memref<8x128xf32, #tpu.memory_space<vmem>>, vector<8x128xf32>
    %c9_i32 = arith.constant 9 : i32
    %2 = tpu.dynamic_rotate %1 by %c9_i32 dim 1 : vector<8x128xf32>, i32 -> vector<8x128xf32>
    %3 = vector.extract_strided_slice %0 {offsets = [0, 0], sizes = [1, 128], strides = [1, 1]} : vector<9x128xf32> to vector<1x128xf32>
    %4 = vector.broadcast %3 : vector<1x128xf32> to vector<8x128xf32>
    %5 = arith.mulf %2, %4 : vector<8x128xf32>
    %c0_3 = arith.constant 0 : index
    %c0_4 = arith.constant 0 : index
    %c0_5 = arith.constant 0 : index
    %6 = vector.load %arg2[%c0_3, %c0_4, %c0_5] : memref<9x4x8xbf16, #tpu.memory_space<vmem>>, vector<1x4x8xbf16>
    %7 = vector.shape_cast %6 : vector<1x4x8xbf16> to vector<4x8xbf16>
    %8 = arith.truncf %5 : vector<8x128xf32> to vector<8x128xbf16>
    %cst = arith.constant dense<0.000000e+00> : vector<4x128xf32>
    %9 = tpu.matmul %7, %8, %cst {dimension_numbers = #tpu.dot_dimension_numbers<[1], [0], [0], [1], [0, 0, 1, 1], [], []>} : vector<4x8xbf16>, vector<8x128xbf16>, vector<4x128xf32> -> vector<4x128xf32>
    %c8_i32 = arith.constant 8 : i32
    %10 = tpu.dynamic_rotate %1 by %c8_i32 dim 1 : vector<8x128xf32>, i32 -> vector<8x128xf32>
    %11 = vector.extract_strided_slice %0 {offsets = [1, 0], sizes = [1, 128], strides = [1, 1]} : vector<9x128xf32> to vector<1x128xf32>
    %12 = vector.broadcast %11 : vector<1x128xf32> to vector<8x128xf32>
    %13 = arith.mulf %10, %12 : vector<8x128xf32>
    %c1 = arith.constant 1 : index
    %c0_6 = arith.constant 0 : index
    %c0_7 = arith.constant 0 : index
    %14 = vector.load %arg2[%c1, %c0_6, %c0_7] : memref<9x4x8xbf16, #tpu.memory_space<vmem>>, vector<1x4x8xbf16>
    %15 = vector.shape_cast %14 : vector<1x4x8xbf16> to vector<4x8xbf16>
    %16 = arith.truncf %13 : vector<8x128xf32> to vector<8x128xbf16>
    %cst_8 = arith.constant dense<0.000000e+00> : vector<4x128xf32>
    %17 = tpu.matmul %15, %16, %cst_8 {dimension_numbers = #tpu.dot_dimension_numbers<[1], [0], [0], [1], [0, 0, 1, 1], [], []>} : vector<4x8xbf16>, vector<8x128xbf16>, vector<4x128xf32> -> vector<4x128xf32>
    %18 = arith.addf %9, %17 : vector<4x128xf32>
    %c7_i32 = arith.constant 7 : i32
    %19 = tpu.dynamic_rotate %1 by %c7_i32 dim 1 : vector<8x128xf32>, i32 -> vector<8x128xf32>
    %20 = vector.extract_strided_slice %0 {offsets = [2, 0], sizes = [1, 128], strides = [1, 1]} : vector<9x128xf32> to vector<1x128xf32>
    %21 = vector.broadcast %20 : vector<1x128xf32> to vector<8x128xf32>
    %22 = arith.mulf %19, %21 : vector<8x128xf32>
    %c2 = arith.constant 2 : index
    %c0_9 = arith.constant 0 : index
    %c0_10 = arith.constant 0 : index
    %23 = vector.load %arg2[%c2, %c0_9, %c0_10] : memref<9x4x8xbf16, #tpu.memory_space<vmem>>, vector<1x4x8xbf16>
    %24 = vector.shape_cast %23 : vector<1x4x8xbf16> to vector<4x8xbf16>
    %25 = arith.truncf %22 : vector<8x128xf32> to vector<8x128xbf16>
    %cst_11 = arith.constant dense<0.000000e+00> : vector<4x128xf32>
    %26 = tpu.matmul %24, %25, %cst_11 {dimension_numbers = #tpu.dot_dimension_numbers<[1], [0], [0], [1], [0, 0, 1, 1], [], []>} : vector<4x8xbf16>, vector<8x128xbf16>, vector<4x128xf32> -> vector<4x128xf32>
    %27 = arith.addf %18, %26 : vector<4x128xf32>
    %c1_i32 = arith.constant 1 : i32
    %28 = tpu.dynamic_rotate %1 by %c1_i32 dim 1 : vector<8x128xf32>, i32 -> vector<8x128xf32>
    %29 = vector.extract_strided_slice %0 {offsets = [3, 0], sizes = [1, 128], strides = [1, 1]} : vector<9x128xf32> to vector<1x128xf32>
    %30 = vector.broadcast %29 : vector<1x128xf32> to vector<8x128xf32>
    %31 = arith.mulf %28, %30 : vector<8x128xf32>
    %c3 = arith.constant 3 : index
    %c0_12 = arith.constant 0 : index
    %c0_13 = arith.constant 0 : index
    %32 = vector.load %arg2[%c3, %c0_12, %c0_13] : memref<9x4x8xbf16, #tpu.memory_space<vmem>>, vector<1x4x8xbf16>
    %33 = vector.shape_cast %32 : vector<1x4x8xbf16> to vector<4x8xbf16>
    %34 = arith.truncf %31 : vector<8x128xf32> to vector<8x128xbf16>
    %cst_14 = arith.constant dense<0.000000e+00> : vector<4x128xf32>
    %35 = tpu.matmul %33, %34, %cst_14 {dimension_numbers = #tpu.dot_dimension_numbers<[1], [0], [0], [1], [0, 0, 1, 1], [], []>} : vector<4x8xbf16>, vector<8x128xbf16>, vector<4x128xf32> -> vector<4x128xf32>
    %36 = arith.addf %27, %35 : vector<4x128xf32>
    %c4 = arith.constant 4 : index
    %c0_15 = arith.constant 0 : index
    %c0_16 = arith.constant 0 : index
    %37 = vector.load %arg2[%c4, %c0_15, %c0_16] : memref<9x4x8xbf16, #tpu.memory_space<vmem>>, vector<1x4x8xbf16>
    %38 = vector.shape_cast %37 : vector<1x4x8xbf16> to vector<4x8xbf16>
    %39 = arith.truncf %1 : vector<8x128xf32> to vector<8x128xbf16>
    %cst_17 = arith.constant dense<0.000000e+00> : vector<4x128xf32>
    %40 = tpu.matmul %38, %39, %cst_17 {dimension_numbers = #tpu.dot_dimension_numbers<[1], [0], [0], [1], [0, 0, 1, 1], [], []>} : vector<4x8xbf16>, vector<8x128xbf16>, vector<4x128xf32> -> vector<4x128xf32>
    %41 = arith.addf %36, %40 : vector<4x128xf32>
    %c127_i32 = arith.constant 127 : i32
    %42 = tpu.dynamic_rotate %1 by %c127_i32 dim 1 : vector<8x128xf32>, i32 -> vector<8x128xf32>
    %43 = vector.extract_strided_slice %0 {offsets = [5, 0], sizes = [1, 128], strides = [1, 1]} : vector<9x128xf32> to vector<1x128xf32>
    %44 = vector.broadcast %43 : vector<1x128xf32> to vector<8x128xf32>
    %45 = arith.mulf %42, %44 : vector<8x128xf32>
    %c5 = arith.constant 5 : index
    %c0_18 = arith.constant 0 : index
    %c0_19 = arith.constant 0 : index
    %46 = vector.load %arg2[%c5, %c0_18, %c0_19] : memref<9x4x8xbf16, #tpu.memory_space<vmem>>, vector<1x4x8xbf16>
    %47 = vector.shape_cast %46 : vector<1x4x8xbf16> to vector<4x8xbf16>
    %48 = arith.truncf %45 : vector<8x128xf32> to vector<8x128xbf16>
    %cst_20 = arith.constant dense<0.000000e+00> : vector<4x128xf32>
    %49 = tpu.matmul %47, %48, %cst_20 {dimension_numbers = #tpu.dot_dimension_numbers<[1], [0], [0], [1], [0, 0, 1, 1], [], []>} : vector<4x8xbf16>, vector<8x128xbf16>, vector<4x128xf32> -> vector<4x128xf32>
    %50 = arith.addf %41, %49 : vector<4x128xf32>
    %c121_i32 = arith.constant 121 : i32
    %51 = tpu.dynamic_rotate %1 by %c121_i32 dim 1 : vector<8x128xf32>, i32 -> vector<8x128xf32>
    %52 = vector.extract_strided_slice %0 {offsets = [6, 0], sizes = [1, 128], strides = [1, 1]} : vector<9x128xf32> to vector<1x128xf32>
    %53 = vector.broadcast %52 : vector<1x128xf32> to vector<8x128xf32>
    %54 = arith.mulf %51, %53 : vector<8x128xf32>
    %c6 = arith.constant 6 : index
    %c0_21 = arith.constant 0 : index
    %c0_22 = arith.constant 0 : index
    %55 = vector.load %arg2[%c6, %c0_21, %c0_22] : memref<9x4x8xbf16, #tpu.memory_space<vmem>>, vector<1x4x8xbf16>
    %56 = vector.shape_cast %55 : vector<1x4x8xbf16> to vector<4x8xbf16>
    %57 = arith.truncf %54 : vector<8x128xf32> to vector<8x128xbf16>
    %cst_23 = arith.constant dense<0.000000e+00> : vector<4x128xf32>
    %58 = tpu.matmul %56, %57, %cst_23 {dimension_numbers = #tpu.dot_dimension_numbers<[1], [0], [0], [1], [0, 0, 1, 1], [], []>} : vector<4x8xbf16>, vector<8x128xbf16>, vector<4x128xf32> -> vector<4x128xf32>
    %59 = arith.addf %50, %58 : vector<4x128xf32>
    %c120_i32 = arith.constant 120 : i32
    %60 = tpu.dynamic_rotate %1 by %c120_i32 dim 1 : vector<8x128xf32>, i32 -> vector<8x128xf32>
    %61 = vector.extract_strided_slice %0 {offsets = [7, 0], sizes = [1, 128], strides = [1, 1]} : vector<9x128xf32> to vector<1x128xf32>
    %62 = vector.broadcast %61 : vector<1x128xf32> to vector<8x128xf32>
    %63 = arith.mulf %60, %62 : vector<8x128xf32>
    %c7 = arith.constant 7 : index
    %c0_24 = arith.constant 0 : index
    %c0_25 = arith.constant 0 : index
    %64 = vector.load %arg2[%c7, %c0_24, %c0_25] : memref<9x4x8xbf16, #tpu.memory_space<vmem>>, vector<1x4x8xbf16>
    %65 = vector.shape_cast %64 : vector<1x4x8xbf16> to vector<4x8xbf16>
    %66 = arith.truncf %63 : vector<8x128xf32> to vector<8x128xbf16>
    %cst_26 = arith.constant dense<0.000000e+00> : vector<4x128xf32>
    %67 = tpu.matmul %65, %66, %cst_26 {dimension_numbers = #tpu.dot_dimension_numbers<[1], [0], [0], [1], [0, 0, 1, 1], [], []>} : vector<4x8xbf16>, vector<8x128xbf16>, vector<4x128xf32> -> vector<4x128xf32>
    %68 = arith.addf %59, %67 : vector<4x128xf32>
    %c119_i32 = arith.constant 119 : i32
    %69 = tpu.dynamic_rotate %1 by %c119_i32 dim 1 : vector<8x128xf32>, i32 -> vector<8x128xf32>
    %70 = vector.extract_strided_slice %0 {offsets = [8, 0], sizes = [1, 128], strides = [1, 1]} : vector<9x128xf32> to vector<1x128xf32>
    %71 = vector.broadcast %70 : vector<1x128xf32> to vector<8x128xf32>
    %72 = arith.mulf %69, %71 : vector<8x128xf32>
    %c8 = arith.constant 8 : index
    %c0_27 = arith.constant 0 : index
    %c0_28 = arith.constant 0 : index
    %73 = vector.load %arg2[%c8, %c0_27, %c0_28] : memref<9x4x8xbf16, #tpu.memory_space<vmem>>, vector<1x4x8xbf16>
    %74 = vector.shape_cast %73 : vector<1x4x8xbf16> to vector<4x8xbf16>
    %75 = arith.truncf %72 : vector<8x128xf32> to vector<8x128xbf16>
    %cst_29 = arith.constant dense<0.000000e+00> : vector<4x128xf32>
    %76 = tpu.matmul %74, %75, %cst_29 {dimension_numbers = #tpu.dot_dimension_numbers<[1], [0], [0], [1], [0, 0, 1, 1], [], []>} : vector<4x8xbf16>, vector<8x128xbf16>, vector<4x128xf32> -> vector<4x128xf32>
    %77 = arith.addf %68, %76 : vector<4x128xf32>
    %cst_30 = arith.constant dense<0.000000e+00> : vector<4xf32>
    %78 = vector.multi_reduction <add>, %77, %cst_30 [1] : vector<4x128xf32> to vector<4xf32>
    %79 = vector.shape_cast %78 : vector<4xf32> to vector<4x1xf32>
    %cst_31 = arith.constant 7.812500e-03 : f32
    %80 = vector.broadcast %cst_31 : f32 to vector<4x1xf32>
    %81 = arith.mulf %79, %80 : vector<4x1xf32>
    %82 = vector.broadcast %81 : vector<4x1xf32> to vector<4x128xf32>
    %83 = arith.subf %77, %82 : vector<4x128xf32>
    %84 = arith.mulf %83, %83 : vector<4x128xf32>
    %cst_32 = arith.constant dense<0.000000e+00> : vector<4xf32>
    %85 = vector.multi_reduction <add>, %84, %cst_32 [1] : vector<4x128xf32> to vector<4xf32>
    %86 = vector.shape_cast %85 : vector<4xf32> to vector<4x1xf32>
    %cst_33 = arith.constant 7.812500e-03 : f32
    %87 = vector.broadcast %cst_33 : f32 to vector<4x1xf32>
    %88 = arith.mulf %86, %87 : vector<4x1xf32>
    %c0_34 = arith.constant 0 : index
    %c0_35 = arith.constant 0 : index
    %89 = vector.load %arg3[%c0_34, %c0_35] : memref<4x1xf32, #tpu.memory_space<vmem>>, vector<4x1xf32>
    %cst_36 = arith.constant 9.99999974E-6 : f32
    %90 = vector.broadcast %cst_36 : f32 to vector<4x1xf32>
    %91 = arith.addf %88, %90 : vector<4x1xf32>
    %92 = math.rsqrt %91 : vector<4x1xf32>
    %93 = arith.mulf %89, %92 : vector<4x1xf32>
    %94 = vector.broadcast %93 : vector<4x1xf32> to vector<4x128xf32>
    %95 = arith.mulf %83, %94 : vector<4x128xf32>
    %c0_37 = arith.constant 0 : index
    %c0_38 = arith.constant 0 : index
    %96 = vector.load %arg4[%c0_37, %c0_38] : memref<4x1xf32, #tpu.memory_space<vmem>>, vector<4x1xf32>
    %97 = vector.broadcast %96 : vector<4x1xf32> to vector<4x128xf32>
    %98 = arith.addf %95, %97 : vector<4x128xf32>
    %cst_39 = arith.constant 0.000000e+00 : f32
    %99 = vector.broadcast %cst_39 : f32 to vector<4x128xf32>
    %100 = arith.maximumf %98, %99 : vector<4x128xf32>
    %c9_i32_40 = arith.constant 9 : i32
    %101 = tpu.dynamic_rotate %100 by %c9_i32_40 dim 1 : vector<4x128xf32>, i32 -> vector<4x128xf32>
    %102 = vector.extract_strided_slice %0 {offsets = [0, 0], sizes = [1, 128], strides = [1, 1]} : vector<9x128xf32> to vector<1x128xf32>
    %103 = vector.broadcast %102 : vector<1x128xf32> to vector<4x128xf32>
    %104 = arith.mulf %101, %103 : vector<4x128xf32>
    %c0_41 = arith.constant 0 : index
    %c0_42 = arith.constant 0 : index
    %c0_43 = arith.constant 0 : index
    %105 = vector.load %arg5[%c0_41, %c0_42, %c0_43] : memref<9x2x4xbf16, #tpu.memory_space<vmem>>, vector<1x2x4xbf16>
    %106 = vector.shape_cast %105 : vector<1x2x4xbf16> to vector<2x4xbf16>
    %107 = arith.truncf %104 : vector<4x128xf32> to vector<4x128xbf16>
    %cst_44 = arith.constant dense<0.000000e+00> : vector<2x128xf32>
    %108 = tpu.matmul %106, %107, %cst_44 {dimension_numbers = #tpu.dot_dimension_numbers<[1], [0], [0], [1], [0, 0, 1, 1], [], []>} : vector<2x4xbf16>, vector<4x128xbf16>, vector<2x128xf32> -> vector<2x128xf32>
    %c8_i32_45 = arith.constant 8 : i32
    %109 = tpu.dynamic_rotate %100 by %c8_i32_45 dim 1 : vector<4x128xf32>, i32 -> vector<4x128xf32>
    %110 = vector.extract_strided_slice %0 {offsets = [1, 0], sizes = [1, 128], strides = [1, 1]} : vector<9x128xf32> to vector<1x128xf32>
    %111 = vector.broadcast %110 : vector<1x128xf32> to vector<4x128xf32>
    %112 = arith.mulf %109, %111 : vector<4x128xf32>
    %c1_46 = arith.constant 1 : index
    %c0_47 = arith.constant 0 : index
    %c0_48 = arith.constant 0 : index
    %113 = vector.load %arg5[%c1_46, %c0_47, %c0_48] : memref<9x2x4xbf16, #tpu.memory_space<vmem>>, vector<1x2x4xbf16>
    %114 = vector.shape_cast %113 : vector<1x2x4xbf16> to vector<2x4xbf16>
    %115 = arith.truncf %112 : vector<4x128xf32> to vector<4x128xbf16>
    %cst_49 = arith.constant dense<0.000000e+00> : vector<2x128xf32>
    %116 = tpu.matmul %114, %115, %cst_49 {dimension_numbers = #tpu.dot_dimension_numbers<[1], [0], [0], [1], [0, 0, 1, 1], [], []>} : vector<2x4xbf16>, vector<4x128xbf16>, vector<2x128xf32> -> vector<2x128xf32>
    %117 = arith.addf %108, %116 : vector<2x128xf32>
    %c7_i32_50 = arith.constant 7 : i32
    %118 = tpu.dynamic_rotate %100 by %c7_i32_50 dim 1 : vector<4x128xf32>, i32 -> vector<4x128xf32>
    %119 = vector.extract_strided_slice %0 {offsets = [2, 0], sizes = [1, 128], strides = [1, 1]} : vector<9x128xf32> to vector<1x128xf32>
    %120 = vector.broadcast %119 : vector<1x128xf32> to vector<4x128xf32>
    %121 = arith.mulf %118, %120 : vector<4x128xf32>
    %c2_51 = arith.constant 2 : index
    %c0_52 = arith.constant 0 : index
    %c0_53 = arith.constant 0 : index
    %122 = vector.load %arg5[%c2_51, %c0_52, %c0_53] : memref<9x2x4xbf16, #tpu.memory_space<vmem>>, vector<1x2x4xbf16>
    %123 = vector.shape_cast %122 : vector<1x2x4xbf16> to vector<2x4xbf16>
    %124 = arith.truncf %121 : vector<4x128xf32> to vector<4x128xbf16>
    %cst_54 = arith.constant dense<0.000000e+00> : vector<2x128xf32>
    %125 = tpu.matmul %123, %124, %cst_54 {dimension_numbers = #tpu.dot_dimension_numbers<[1], [0], [0], [1], [0, 0, 1, 1], [], []>} : vector<2x4xbf16>, vector<4x128xbf16>, vector<2x128xf32> -> vector<2x128xf32>
    %126 = arith.addf %117, %125 : vector<2x128xf32>
    %c1_i32_55 = arith.constant 1 : i32
    %127 = tpu.dynamic_rotate %100 by %c1_i32_55 dim 1 : vector<4x128xf32>, i32 -> vector<4x128xf32>
    %128 = vector.extract_strided_slice %0 {offsets = [3, 0], sizes = [1, 128], strides = [1, 1]} : vector<9x128xf32> to vector<1x128xf32>
    %129 = vector.broadcast %128 : vector<1x128xf32> to vector<4x128xf32>
    %130 = arith.mulf %127, %129 : vector<4x128xf32>
    %c3_56 = arith.constant 3 : index
    %c0_57 = arith.constant 0 : index
    %c0_58 = arith.constant 0 : index
    %131 = vector.load %arg5[%c3_56, %c0_57, %c0_58] : memref<9x2x4xbf16, #tpu.memory_space<vmem>>, vector<1x2x4xbf16>
    %132 = vector.shape_cast %131 : vector<1x2x4xbf16> to vector<2x4xbf16>
    %133 = arith.truncf %130 : vector<4x128xf32> to vector<4x128xbf16>
    %cst_59 = arith.constant dense<0.000000e+00> : vector<2x128xf32>
    %134 = tpu.matmul %132, %133, %cst_59 {dimension_numbers = #tpu.dot_dimension_numbers<[1], [0], [0], [1], [0, 0, 1, 1], [], []>} : vector<2x4xbf16>, vector<4x128xbf16>, vector<2x128xf32> -> vector<2x128xf32>
    %135 = arith.addf %126, %134 : vector<2x128xf32>
    %c4_60 = arith.constant 4 : index
    %c0_61 = arith.constant 0 : index
    %c0_62 = arith.constant 0 : index
    %136 = vector.load %arg5[%c4_60, %c0_61, %c0_62] : memref<9x2x4xbf16, #tpu.memory_space<vmem>>, vector<1x2x4xbf16>
    %137 = vector.shape_cast %136 : vector<1x2x4xbf16> to vector<2x4xbf16>
    %138 = arith.truncf %100 : vector<4x128xf32> to vector<4x128xbf16>
    %cst_63 = arith.constant dense<0.000000e+00> : vector<2x128xf32>
    %139 = tpu.matmul %137, %138, %cst_63 {dimension_numbers = #tpu.dot_dimension_numbers<[1], [0], [0], [1], [0, 0, 1, 1], [], []>} : vector<2x4xbf16>, vector<4x128xbf16>, vector<2x128xf32> -> vector<2x128xf32>
    %140 = arith.addf %135, %139 : vector<2x128xf32>
    %c127_i32_64 = arith.constant 127 : i32
    %141 = tpu.dynamic_rotate %100 by %c127_i32_64 dim 1 : vector<4x128xf32>, i32 -> vector<4x128xf32>
    %142 = vector.extract_strided_slice %0 {offsets = [5, 0], sizes = [1, 128], strides = [1, 1]} : vector<9x128xf32> to vector<1x128xf32>
    %143 = vector.broadcast %142 : vector<1x128xf32> to vector<4x128xf32>
    %144 = arith.mulf %141, %143 : vector<4x128xf32>
    %c5_65 = arith.constant 5 : index
    %c0_66 = arith.constant 0 : index
    %c0_67 = arith.constant 0 : index
    %145 = vector.load %arg5[%c5_65, %c0_66, %c0_67] : memref<9x2x4xbf16, #tpu.memory_space<vmem>>, vector<1x2x4xbf16>
    %146 = vector.shape_cast %145 : vector<1x2x4xbf16> to vector<2x4xbf16>
    %147 = arith.truncf %144 : vector<4x128xf32> to vector<4x128xbf16>
    %cst_68 = arith.constant dense<0.000000e+00> : vector<2x128xf32>
    %148 = tpu.matmul %146, %147, %cst_68 {dimension_numbers = #tpu.dot_dimension_numbers<[1], [0], [0], [1], [0, 0, 1, 1], [], []>} : vector<2x4xbf16>, vector<4x128xbf16>, vector<2x128xf32> -> vector<2x128xf32>
    %149 = arith.addf %140, %148 : vector<2x128xf32>
    %c121_i32_69 = arith.constant 121 : i32
    %150 = tpu.dynamic_rotate %100 by %c121_i32_69 dim 1 : vector<4x128xf32>, i32 -> vector<4x128xf32>
    %151 = vector.extract_strided_slice %0 {offsets = [6, 0], sizes = [1, 128], strides = [1, 1]} : vector<9x128xf32> to vector<1x128xf32>
    %152 = vector.broadcast %151 : vector<1x128xf32> to vector<4x128xf32>
    %153 = arith.mulf %150, %152 : vector<4x128xf32>
    %c6_70 = arith.constant 6 : index
    %c0_71 = arith.constant 0 : index
    %c0_72 = arith.constant 0 : index
    %154 = vector.load %arg5[%c6_70, %c0_71, %c0_72] : memref<9x2x4xbf16, #tpu.memory_space<vmem>>, vector<1x2x4xbf16>
    %155 = vector.shape_cast %154 : vector<1x2x4xbf16> to vector<2x4xbf16>
    %156 = arith.truncf %153 : vector<4x128xf32> to vector<4x128xbf16>
    %cst_73 = arith.constant dense<0.000000e+00> : vector<2x128xf32>
    %157 = tpu.matmul %155, %156, %cst_73 {dimension_numbers = #tpu.dot_dimension_numbers<[1], [0], [0], [1], [0, 0, 1, 1], [], []>} : vector<2x4xbf16>, vector<4x128xbf16>, vector<2x128xf32> -> vector<2x128xf32>
    %158 = arith.addf %149, %157 : vector<2x128xf32>
    %c120_i32_74 = arith.constant 120 : i32
    %159 = tpu.dynamic_rotate %100 by %c120_i32_74 dim 1 : vector<4x128xf32>, i32 -> vector<4x128xf32>
    %160 = vector.extract_strided_slice %0 {offsets = [7, 0], sizes = [1, 128], strides = [1, 1]} : vector<9x128xf32> to vector<1x128xf32>
    %161 = vector.broadcast %160 : vector<1x128xf32> to vector<4x128xf32>
    %162 = arith.mulf %159, %161 : vector<4x128xf32>
    %c7_75 = arith.constant 7 : index
    %c0_76 = arith.constant 0 : index
    %c0_77 = arith.constant 0 : index
    %163 = vector.load %arg5[%c7_75, %c0_76, %c0_77] : memref<9x2x4xbf16, #tpu.memory_space<vmem>>, vector<1x2x4xbf16>
    %164 = vector.shape_cast %163 : vector<1x2x4xbf16> to vector<2x4xbf16>
    %165 = arith.truncf %162 : vector<4x128xf32> to vector<4x128xbf16>
    %cst_78 = arith.constant dense<0.000000e+00> : vector<2x128xf32>
    %166 = tpu.matmul %164, %165, %cst_78 {dimension_numbers = #tpu.dot_dimension_numbers<[1], [0], [0], [1], [0, 0, 1, 1], [], []>} : vector<2x4xbf16>, vector<4x128xbf16>, vector<2x128xf32> -> vector<2x128xf32>
    %167 = arith.addf %158, %166 : vector<2x128xf32>
    %c119_i32_79 = arith.constant 119 : i32
    %168 = tpu.dynamic_rotate %100 by %c119_i32_79 dim 1 : vector<4x128xf32>, i32 -> vector<4x128xf32>
    %169 = vector.extract_strided_slice %0 {offsets = [8, 0], sizes = [1, 128], strides = [1, 1]} : vector<9x128xf32> to vector<1x128xf32>
    %170 = vector.broadcast %169 : vector<1x128xf32> to vector<4x128xf32>
    %171 = arith.mulf %168, %170 : vector<4x128xf32>
    %c8_80 = arith.constant 8 : index
    %c0_81 = arith.constant 0 : index
    %c0_82 = arith.constant 0 : index
    %172 = vector.load %arg5[%c8_80, %c0_81, %c0_82] : memref<9x2x4xbf16, #tpu.memory_space<vmem>>, vector<1x2x4xbf16>
    %173 = vector.shape_cast %172 : vector<1x2x4xbf16> to vector<2x4xbf16>
    %174 = arith.truncf %171 : vector<4x128xf32> to vector<4x128xbf16>
    %cst_83 = arith.constant dense<0.000000e+00> : vector<2x128xf32>
    %175 = tpu.matmul %173, %174, %cst_83 {dimension_numbers = #tpu.dot_dimension_numbers<[1], [0], [0], [1], [0, 0, 1, 1], [], []>} : vector<2x4xbf16>, vector<4x128xbf16>, vector<2x128xf32> -> vector<2x128xf32>
    %176 = arith.addf %167, %175 : vector<2x128xf32>
    %c0_84 = arith.constant 0 : index
    %c0_85 = arith.constant 0 : index
    %177 = vector.load %arg7[%c0_84, %c0_85] : memref<1x7xf32, #tpu.memory_space<vmem>>, vector<1x7xf32>
    %178 = vector.extract_strided_slice %176 {offsets = [0, 0], sizes = [1, 64], strides = [1, 1]} : vector<2x128xf32> to vector<1x64xf32>
    %179 = arith.truncf %178 : vector<1x64xf32> to vector<1x64xbf16>
    %c0_86 = arith.constant 0 : index
    %c0_87 = arith.constant 0 : index
    %c0_88 = arith.constant 0 : index
    %180 = vector.load %arg6[%c0_86, %c0_87, %c0_88] : memref<2x64x7xbf16, #tpu.memory_space<vmem>>, vector<1x64x7xbf16>
    %181 = vector.shape_cast %180 : vector<1x64x7xbf16> to vector<64x7xbf16>
    %cst_89 = arith.constant dense<0.000000e+00> : vector<1x7xf32>
    %182 = tpu.matmul %179, %181, %cst_89 {dimension_numbers = #tpu.dot_dimension_numbers<[1], [0], [0], [1], [0, 0, 1, 1], [], []>} : vector<1x64xbf16>, vector<64x7xbf16>, vector<1x7xf32> -> vector<1x7xf32>
    %183 = arith.addf %177, %182 : vector<1x7xf32>
    %184 = vector.extract_strided_slice %176 {offsets = [1, 0], sizes = [1, 64], strides = [1, 1]} : vector<2x128xf32> to vector<1x64xf32>
    %185 = arith.truncf %184 : vector<1x64xf32> to vector<1x64xbf16>
    %c1_90 = arith.constant 1 : index
    %c0_91 = arith.constant 0 : index
    %c0_92 = arith.constant 0 : index
    %186 = vector.load %arg6[%c1_90, %c0_91, %c0_92] : memref<2x64x7xbf16, #tpu.memory_space<vmem>>, vector<1x64x7xbf16>
    %187 = vector.shape_cast %186 : vector<1x64x7xbf16> to vector<64x7xbf16>
    %cst_93 = arith.constant dense<0.000000e+00> : vector<1x7xf32>
    %188 = tpu.matmul %185, %187, %cst_93 {dimension_numbers = #tpu.dot_dimension_numbers<[1], [0], [0], [1], [0, 0, 1, 1], [], []>} : vector<1x64xbf16>, vector<64x7xbf16>, vector<1x7xf32> -> vector<1x7xf32>
    %189 = arith.addf %183, %188 : vector<1x7xf32>
    %c0_94 = arith.constant 0 : index
    %c0_95 = arith.constant 0 : index
    %190 = vector.load %arg8[%c0_94, %c0_95] : memref<2x7xf32, #tpu.memory_space<vmem>>, vector<1x7xf32>
    tpu.vector_store %arg8[%c0_94, %c0_95], %189 {strides = array<i32>} : memref<2x7xf32, #tpu.memory_space<vmem>>, vector<1x7xf32>,
    %c0_96 = arith.constant 0 : index
    %c0_97 = arith.constant 0 : index
    %191 = vector.load %arg7[%c0_96, %c0_97] : memref<1x7xf32, #tpu.memory_space<vmem>>, vector<1x7xf32>
    %192 = vector.extract_strided_slice %176 {offsets = [0, 64], sizes = [1, 64], strides = [1, 1]} : vector<2x128xf32> to vector<1x64xf32>
    %193 = arith.truncf %192 : vector<1x64xf32> to vector<1x64xbf16>
    %c0_98 = arith.constant 0 : index
    %c0_99 = arith.constant 0 : index
    %c0_100 = arith.constant 0 : index
    %194 = vector.load %arg6[%c0_98, %c0_99, %c0_100] : memref<2x64x7xbf16, #tpu.memory_space<vmem>>, vector<1x64x7xbf16>
    %195 = vector.shape_cast %194 : vector<1x64x7xbf16> to vector<64x7xbf16>
    %cst_101 = arith.constant dense<0.000000e+00> : vector<1x7xf32>
    %196 = tpu.matmul %193, %195, %cst_101 {dimension_numbers = #tpu.dot_dimension_numbers<[1], [0], [0], [1], [0, 0, 1, 1], [], []>} : vector<1x64xbf16>, vector<64x7xbf16>, vector<1x7xf32> -> vector<1x7xf32>
    %197 = arith.addf %191, %196 : vector<1x7xf32>
    %198 = vector.extract_strided_slice %176 {offsets = [1, 64], sizes = [1, 64], strides = [1, 1]} : vector<2x128xf32> to vector<1x64xf32>
    %199 = arith.truncf %198 : vector<1x64xf32> to vector<1x64xbf16>
    %c1_102 = arith.constant 1 : index
    %c0_103 = arith.constant 0 : index
    %c0_104 = arith.constant 0 : index
    %200 = vector.load %arg6[%c1_102, %c0_103, %c0_104] : memref<2x64x7xbf16, #tpu.memory_space<vmem>>, vector<1x64x7xbf16>
    %201 = vector.shape_cast %200 : vector<1x64x7xbf16> to vector<64x7xbf16>
    %cst_105 = arith.constant dense<0.000000e+00> : vector<1x7xf32>
    %202 = tpu.matmul %199, %201, %cst_105 {dimension_numbers = #tpu.dot_dimension_numbers<[1], [0], [0], [1], [0, 0, 1, 1], [], []>} : vector<1x64xbf16>, vector<64x7xbf16>, vector<1x7xf32> -> vector<1x7xf32>
    %203 = arith.addf %197, %202 : vector<1x7xf32>
    %c1_106 = arith.constant 1 : index
    %c0_107 = arith.constant 0 : index
    %204 = vector.load %arg8[%c1_106, %c0_107] : memref<2x7xf32, #tpu.memory_space<vmem>>, vector<1x7xf32>
    tpu.vector_store %arg8[%c1_106, %c0_107], %203 {strides = array<i32>} : memref<2x7xf32, #tpu.memory_space<vmem>>, vector<1x7xf32>,
    return
  }
}

</mosaic_0001>

<bundles_post_ra>
// kernel: prediction_forward.1
= control target key start
LH: loop header
LB: loop body
LE: loop exit
PB: predicated region body
PF: predicated region fallthrough
CT: control target
= control target key end

     0   :  { %v1751_v1 = vmov 0.0   ;;  %vm1752_vm0 = vmmov 0   ;;  %s1753_s29 = smov 8   ;;  %s1754_s30 = smov 7   ;;  %v35_v2 = vlaneseq  ;;  %vm56_vm1 = vcmask 1043456   ;;  %s2117_s0 = inlined_call_operand.vmem [shape: f32[8,128], index: 0, kind: input, shape index: {}]   ;;  %s2118_s1 = inlined_call_operand.vmem [shape: f32[9,128], index: 1, kind: input, shape index: {}]   ;;  %s2119_s2 = inlined_call_operand.vmem [shape: bf16[9,4,8], index: 2, kind: input, shape index: {}]   ;;  %s2120_s4 = inlined_call_operand.vmem [shape: f32[4,1], index: 4, kind: input, shape index: {}]   ;;  %s2121_s3 = inlined_call_operand.vmem [shape: f32[4,1], index: 3, kind: input, shape index: {}]   ;;  %s2122_s6 = inlined_call_operand.vmem [shape: bf16[2,64,7], index: 6, kind: input, shape index: {}]   ;;  %s2123_s5 = inlined_call_operand.vmem [shape: bf16[9,2,4], index: 5, kind: input, shape index: {}]   ;;  %s2124_s7 = inlined_call_operand.vmem [shape: f32[1,7], index: 7, kind: input, shape index: {}]   ;;  %s2125_s8 = inlined_call_operand.vmem [shape: f32[2,7], index: 8, kind: output, shape index: {}]  }
   0x1   :  { %v1811_v0 = vld [vmem:[%s2117_s0] sm:$0xff]  ;;  %1489 = vmatprep.subr.bf16.mxu0 %v1751_v1  ;;  %1491 = vmatprep.mubr.msk.bf16.mxu0 %vm1752_vm0, %v1751_v1  ;;  %s1755_s0 = smov 9   ;;  %s1756_s9 = smov 1   ;;  %vm52_vm2 = vcmask 64512   ;;  %v1369_v44 = vld [vmem:[%s2119_s2 + $0x8] sm:$0x3] }
   0x2   :  { %42 = vrot.lane.b32.xlu0 %v1811_v0, %s1753_s29  ;;  %146 = vrot.lane.b32.xlu1 %v1811_v0, %s1754_s30  ;;  %s1757_s10 = smov 127   ;;  %s1758_s11 = smov 121   ;;  %v36_v3 = vshrl.u32 %v35_v2, 7  ;;  %v30_v5 = vld [vmem:[%s2118_s1] sm:$0xff]  ;;  %v262_v36 = vpack.c.bf16 %v1811_v0, %v1811_v0  ;;  %v1371_v49 = vld [vmem:[%s2119_s2 + $0xa] sm:$0x3] }
   0x3   :  { %1543 = vmatprep.subr.bf16.mxu1 %v1751_v1  ;;  %1545 = vmatprep.mubr.msk.bf16.mxu1 %vm1752_vm0, %v1751_v1  ;;  %s1759_s12 = smov 120   ;;  %s1760_s13 = smov 119   ;;  %v1362_v20 = vld [vmem:[%s2119_s2 + $0x2] sm:$0x3]  ;;  %v40_v28 = vld [vmem:[%s2119_s2] sm:$0x3] }
   0x4   :  { %v371_v4 = vsub.s32 6, %v36_v3  ;;  %v428_v7 = vsub.s32 7, %v36_v3  ;;  %v46_v9 = vsub.s32 1, %v36_v3  ;;  %v37_v11 = vsub.s32 0, %v36_v3  ;;  %v1365_v34 = vld [vmem:[%s2119_s2 + $0x4] sm:$0x3] }
   0x5   :  { %v150_v16 = vsub.s32 2, %v36_v3  ;;  %v207_v27 = vsub.s32 3, %v36_v3  ;;  %v314_v37 = vsub.s32 5, %v36_v3  ;;  %v1367_v38 = vld [vmem:[%s2119_s2 + $0x6] sm:$0x3]  ;;  %v267_v39 = vsel %vm56_vm1, %v262_v36, 0 }
   0x6   :  { %33 = vrot.lane.b32.xlu0 %v1811_v0, %s1755_s0  ;;  %203 = vrot.lane.b32.xlu1 %v1811_v0, %s1756_s9  ;;  %v1838_v6 = vrot.slane %v30_v5, %v371_v4  ;;  %v1840_v8 = vrot.slane %v30_v5, %v428_v7  ;;  %v1842_v10 = vrot.slane %v30_v5, %v46_v9  ;;  %v1373_v54 = vld [vmem:[%s2119_s2 + $0xc] sm:$0x3]  ;;  %v1918_v56 = vld [vmem:[%s2118_s1 + $0x8] ss:$0 sm:$0xff]  ;;  %vm581_vm3 = vcmask 1041408  }
   0x7   :  { %v1845_v14 = vrot.slane %v30_v5, %v37_v11  ;;  %v1853_v22 = vrot.slane %v30_v5, %v150_v16  ;;  %v1865_v30 = vrot.slane %v30_v5, %v207_v27  ;;  %v1886_v40 = vrot.slane %v30_v5, %v314_v37  ;;  %v1375_v60 = vld [vmem:[%s2119_s2 + $0xe] sm:$0x3]  ;;  %v1378_v62 = vld [vmem:[%s2119_s2 + $0x10] sm:$0x3] }
   0x8   :  { %vm577_vm4 = vcmask 31744   ;;  %vm1073_vm5 = vcmask 523264   ;;  %vm1197_vm6 = vcmask 49152  }
   0xa   :  { %310 = vrot.lane.b32.xlu0 %v1811_v0, %s1757_s10  ;;  %367 = vrot.lane.b32.xlu1 %v1811_v0, %s1758_s11 }
   0xe   :  { %424 = vrot.lane.b32.xlu0 %v1811_v0, %s1759_s12  ;;  %481 = vrot.lane.b32.xlu1 %v1811_v0, %s1760_s13 }
  0x74   :  { %v43_v12 = vpop.permute.xlu0 %42  ;;  %v147_v23 = vpop.permute.xlu1 %146 }
  0x75   :  { %v48_v13 = vmul.f32 %v1842_v10, %v43_v12  ;;  %v152_v25 = vmul.f32 %v1853_v22, %v147_v23 }
  0x77   :  { %v51_v15 = vpack.c.bf16 %v48_v13, %v48_v13  ;;  %v155_v26 = vpack.c.bf16 %v152_v25, %v152_v25  ;;  %v1761_v13 = vmov 0  }
  0x78   :  { %v34_v17 = vpop.permute.xlu0 %33  ;;  %v204_v31 = vpop.permute.xlu1 %203  ;;  %1731 = vset.pattern.permute.xlu0 %v1761_v13  ;;  %1732 = vset.pattern.permute.xlu1 %v1761_v13  ;;  %v1744_v13 = vld [vmem:[%s2122_s6 + $0x18] sm:$0xff]  }
  0x79   :  { %v39_v18 = vmul.f32 %v1845_v14, %v34_v17  ;;  %v58_v19 = vsel %vm56_vm1, %v51_v15, 0  ;;  %v160_v29 = vsel %vm56_vm1, %v155_v26, 0  ;;  %v209_v32 = vmul.f32 %v1865_v30, %v204_v31  ;;  %v558_v15 = vld [vmem:[%s2120_s4] sm:$0xf]  ;;  %v1735_v31 = vld [vmem:[%s2122_s6 + $0x10] sm:$0xff]  }
  0x7a   :  { %1490 = vmatpush3.bf16.msra.mxu0 %v58_v19  ;;  %v548_v19 = vld [vmem:[%s2121_s3] sm:$0xf] }
  0x7b   :  { %v41_v21 = vpack.c.bf16 %v39_v18, %v39_v18  ;;  %1495 = vmatprep.subr.bf16.mxu0 %v1751_v1  ;;  %v212_v33 = vpack.c.bf16 %v209_v32, %v209_v32  ;;  %v1736_v32 = vld [vmem:[%s2122_s6 + $0x18] sm:$0xff]  }
  0x7c   :  { %v311_v41 = vpop.permute.xlu0 %310  ;;  %v368_v46 = vpop.permute.xlu1 %367 }
  0x7d   :  { %v104_v24 = vsel %vm56_vm1, %v41_v21, 0  ;;  %1492 = vmatmul.mubr.msk.bf16.vlgmr.msra.gmra.mrb[0].mxu0 %vm52_vm2, %v1362_v20  ;;  %v217_v35 = vsel %vm56_vm1, %v212_v33, 0  ;;  %v316_v42 = vmul.f32 %v1886_v40, %v311_v41  ;;  %v373_v47 = vmul.f32 %v1838_v6, %v368_v46 }
  0x7e   :  { %1496 = vmatpush3.bf16.msra.mxu0 %v104_v24  ;;  %1497 = vmatprep.mubr.msk.bf16.mxu0 %vm1752_vm0, %v1751_v1 }
  0x7f   :  { %1501 = vmatprep.subr.bf16.mxu0 %v1751_v1  ;;  %v319_v43 = vpack.c.bf16 %v316_v42, %v316_v42  ;;  %v376_v48 = vpack.c.bf16 %v373_v47, %v373_v47 }
  0x80   :  { %v425_v51 = vpop.permute.xlu0 %424  ;;  %v482_v57 = vpop.permute.xlu1 %481 }
  0x81   :  { %v324_v45 = vsel %vm56_vm1, %v319_v43, 0  ;;  %v381_v50 = vsel %vm56_vm1, %v376_v48, 0  ;;  %v430_v52 = vmul.f32 %v1840_v8, %v425_v51  ;;  %v487_v58 = vmul.f32 %v1918_v56, %v482_v57 }
  0x83   :  { %v433_v53 = vpack.c.bf16 %v430_v52, %v430_v52  ;;  %v490_v59 = vpack.c.bf16 %v487_v58, %v487_v58 }
  0x85   :  { %v438_v55 = vsel %vm56_vm1, %v433_v53, 0  ;;  %v495_v61 = vsel %vm56_vm1, %v490_v59, 0 }
  0x89   :  { %1498 = vmatmul.mubr.msk.bf16.vlgmr.msra.gmra.mrb[0].mxu0 %vm52_vm2, %v40_v28  ;;  %v1733_v28 = vld [vmem:[%s2122_s6] sm:$0xff]  }
  0x8a   :  { %1502 = vmatpush3.bf16.msra.mxu0 %v160_v29  ;;  %1503 = vmatprep.mubr.msk.bf16.mxu0 %vm1752_vm0, %v1751_v1  ;;  %v1734_v29 = vld [vmem:[%s2122_s6 + $0x8] sm:$0xff]  }
  0x8b   :  { %1507 = vmatprep.subr.bf16.mxu0 %v1751_v1 }
  0x95   :  { %1504 = vmatmul.mubr.msk.bf16.vlgmr.msra.gmra.mrb[0].mxu0 %vm52_vm2, %v1365_v34 }
  0x96   :  { %1508 = vmatpush3.bf16.msra.mxu0 %v217_v35  ;;  %1509 = vmatprep.mubr.msk.bf16.mxu0 %vm1752_vm0, %v1751_v1 }
  0x97   :  { %1513 = vmatprep.subr.bf16.mxu0 %v1751_v1 }
  0xa1   :  { %1510 = vmatmul.mubr.msk.bf16.vlgmr.msra.gmra.mrb[0].mxu0 %vm52_vm2, %v1367_v38 }
  0xa2   :  { %1514 = vmatpush3.bf16.msra.mxu0 %v267_v39  ;;  %1515 = vmatprep.mubr.msk.bf16.mxu0 %vm1752_vm0, %v1751_v1  ;;  %v1380_v39 = vld [vmem:[%s2123_s5 + $0x1] sm:$0x1] }
  0xa3   :  { %1519 = vmatprep.subr.bf16.mxu0 %v1751_v1 }
  0xad   :  { %1516 = vmatmul.mubr.msk.bf16.vlgmr.msra.gmra.mrb[0].mxu0 %vm52_vm2, %v1369_v44  ;;  %v569_v44 = vld [vmem:[%s2123_s5] sm:$0x1] }
  0xae   :  { %1520 = vmatpush3.bf16.msra.mxu0 %v324_v45  ;;  %1521 = vmatprep.mubr.msk.bf16.mxu0 %vm1752_vm0, %v1751_v1 }
  0xaf   :  { %1525 = vmatprep.subr.bf16.mxu0 %v1751_v1 }
  0xb9   :  { %1522 = vmatmul.mubr.msk.bf16.vlgmr.msra.gmra.mrb[0].mxu0 %vm52_vm2, %v1371_v49 }
  0xba   :  { %1526 = vmatpush3.bf16.msra.mxu0 %v381_v50  ;;  %1527 = vmatprep.mubr.msk.bf16.mxu0 %vm1752_vm0, %v1751_v1 }
  0xbb   :  { %1531 = vmatprep.subr.bf16.mxu0 %v1751_v1 }
  0xc5   :  { %1528 = vmatmul.mubr.msk.bf16.vlgmr.msra.gmra.mrb[0].mxu0 %vm52_vm2, %v1373_v54 }
  0xc6   :  { %1532 = vmatpush3.bf16.msra.mxu0 %v438_v55  ;;  %1533 = vmatprep.mubr.msk.bf16.mxu0 %vm1752_vm0, %v1751_v1  ;;  %v1387_v55 = vld [vmem:[%s2123_s5 + $0x4] sm:$0x1] }
  0xc7   :  { %1537 = vmatprep.subr.bf16.mxu0 %v1751_v1 }
  0xd1   :  { %1534 = vmatmul.mubr.msk.bf16.vlgmr.msra.gmra.mrb[0].mxu0 %vm52_vm2, %v1375_v60 }
  0xd2   :  { %1538 = vmatpush3.bf16.msra.mxu0 %v495_v61  ;;  %1539 = vmatprep.mubr.msk.bf16.mxu0 %vm1752_vm0, %v1751_v1 }
  0xd3   :  { %1597 = vmatprep.subr.bf16.mxu0 %v1751_v1 }
  0xdd   :  { %1540 = vmatmul.mubr.msk.bf16.vlgmr.msra.gmra.mrb[0].mxu0 %vm52_vm2, %v1378_v62 }
  0xde   :  { %1605 = vmatprep.mubr.msk.bf16.mxu0 %vm1752_vm0, %v1751_v1  ;;  %1598 = vmatpush3.bf16.msra.mxu0 %v1733_v28  ;;  %v1746_v28 = vld [vmem:[%s2122_s6 + $0x28] sm:$0xff]  }
  0xdf   :  { %1599 = vmatprep.subr.bf16.mxu0 %v1751_v1 }
  0xe2   :  { %1600 = vmatpush3.bf16.msra.mxu0 %v1734_v29  ;;  %v1747_v29 = vld [vmem:[%s2122_s6 + $0x30] sm:$0xff]  }
  0xe3   :  { %1601 = vmatprep.subr.bf16.mxu0 %v1751_v1 }
  0xe6   :  { %1602 = vmatpush3.bf16.msra.mxu0 %v1735_v31  ;;  %v1748_v31 = vld [vmem:[%s2122_s6 + $0x38] sm:$0xff]  }
  0xe7   :  { %1603 = vmatprep.subr.bf16.mxu0 %v1751_v1 }
  0xea   :  { %1604 = vmatpush3.bf16.msra.mxu0 %v1736_v32 }
  0xeb   :  { %1609 = vmatprep.subr.bf16.mxu0 %v1751_v1 }
 0x1b0   :  { %v531_v63 = vpop.f32.mrb[0].mxu0 }
 0x1b1   :  { %v1541_v0 = vpop.f32.mrb[1].mxu0  ;;  %v538_v2 = vsel %vm56_vm1, %v531_v63, 0.0 }
 0x1b2   :  { %539 = vadd.xlane.f32.xlu0 %v538_v2  ;;  %v534_v3 = vpop.f32.mrb[2].mxu0 }
 0x1b3   :  { %v1542_v4 = vpop.f32.mrb[3].mxu0 }
 0x23f   :  { %v540_v5 = vpop.xlane.xlu0 %539 }
 0x240   :  { %v541_v7 = vmul.f32 0.0078125, %v540_v5 }
 0x242   :  { %v542_v9 = vsub.f32 %v531_v63, %v541_v7 }
 0x244   :  { %v543_v11 = vmul.f32 %v542_v9, %v542_v9 }
 0x246   :  { %v544_v12 = vsel %vm56_vm1, %v543_v11, 0.0  ;;  %v1742_v11 = vld [vmem:[%s2122_s6 + $0x8] sm:$0xff]  }
 0x247   :  { %545 = vadd.xlane.f32.xlu1 %v544_v12  ;;  %v1743_v12 = vld [vmem:[%s2122_s6 + $0x10] sm:$0xff]  }
 0x258   :  { %561 = vperm.xlu1 %1732, %v558_v15  }
 0x2d4   :  { %v546_v16 = vpop.xlane.xlu1 %545 }
 0x2d5   :  { %v547_v17 = vmul.f32 0.0078125, %v546_v16  ;;  %v1737_v16 = vld [vmem:[%s2122_s6 + $0x20] sm:$0xff]  }
 0x2d7   :  { %v549_v18 = vadd.f32 1e-05, %v547_v17 }
 0x2d8   :  { %v562_v24 = vpop.permute.xlu1 %561 }
 0x2d9   :  { %1749 = vrsqrt.f32 %v549_v18 }
 0x2e3   :  { %v1750_v20 = vpop.eup %1749 }
 0x2e4   :  { %v551_v21 = vmul.f32 %v1750_v20, %v548_v19 }
 0x2e6   :  { %554 = vperm.xlu0 %1731, %v551_v21  }
 0x365   :  { %v555_v23 = vpop.permute.xlu0 %554 }
 0x366   :  { %v557_v25 = vmul.f32 %v555_v23, %v542_v9  ;;  %v1395_v9 = vld [vmem:[%s2123_s5 + $0x8] sm:$0x1] }
 0x367   :  { %v1738_v23 = vld [vmem:[%s2122_s6 + $0x28] sm:$0xff]  }
 0x368   :  { %v564_v26 = vadd.f32 %v562_v24, %v557_v25  ;;  %v1739_v24 = vld [vmem:[%s2122_s6 + $0x30] sm:$0xff]   ;;  %v1740_v25 = vld [vmem:[%s2122_s6 + $0x38] sm:$0xff]  }
 0x36a   :  { %v565_v27 = vmax.f32 %v564_v26, 0.0  ;;  %v1745_v26 = vld [vmem:[%s2122_s6 + $0x20] sm:$0xff]  }
 0x36c   :  { %933 = vrot.lane.b32.xlu0 %v565_v27, %s1759_s12  ;;  %571 = vrot.lane.b32.xlu1 %v565_v27, %s1753_s29  ;;  %v779_v50 = vpack.c.bf16 %v565_v27, %v565_v27 }
 0x36e   :  { %v784_v51 = vsel %vm581_vm3, %v779_v50, 0 }
 0x370   :  { %566 = vrot.lane.b32.xlu1 %v565_v27, %s1755_s0 }
 0x374   :  { %671 = vrot.lane.b32.xlu1 %v565_v27, %s1754_s30 }
 0x378   :  { %724 = vrot.lane.b32.xlu1 %v565_v27, %s1756_s9 }
 0x37c   :  { %827 = vrot.lane.b32.xlu1 %v565_v27, %s1757_s10  ;;  %s1762_s10 = smov 64  }
 0x380   :  { %880 = vrot.lane.b32.xlu1 %v565_v27, %s1758_s11 }
 0x384   :  { %986 = vrot.lane.b32.xlu1 %v565_v27, %s1760_s13 }
 0x3de   :  { %v572_v33 = vpop.permute.xlu1 %571  ;;  %v934_v62 = vpop.permute.xlu0 %933 }
 0x3df   :  { %v573_v34 = vmul.f32 %v572_v33, %v1842_v10  ;;  %v935_v63 = vmul.f32 %v934_v62, %v1840_v8  ;;  %v1393_v8 = vld [vmem:[%s2123_s5 + $0x7] sm:$0x1]  ;;  %v1039_v33 = vld [vmem:[%s2124_s7] sm:$0x1] }
 0x3e1   :  { %v576_v35 = vpack.c.bf16 %v573_v34, %v573_v34  ;;  %v938_v0 = vpack.c.bf16 %v935_v63, %v935_v63 }
 0x3e2   :  { %v567_v36 = vpop.permute.xlu1 %566 }
 0x3e3   :  { %v568_v37 = vmul.f32 %v567_v36, %v1845_v14  ;;  %v583_v38 = vsel %vm581_vm3, %v576_v35, 0  ;;  %v943_v2 = vsel %vm581_vm3, %v938_v0, 0 }
 0x3e4   :  { %1544 = vmatpush3.bf16.msra.mxu1 %v583_v38 }
 0x3e5   :  { %v570_v41 = vpack.c.bf16 %v568_v37, %v568_v37  ;;  %1549 = vmatprep.subr.bf16.mxu1 %v1751_v1 }
 0x3e6   :  { %v672_v10 = vpop.permute.xlu1 %671 }
 0x3e7   :  { %v629_v42 = vsel %vm581_vm3, %v570_v41, 0  ;;  %1546 = vmatmul.mubr.msk.bf16.vlgmr.msra.gmra.mrb[0].mxu1 %vm577_vm4, %v1380_v39  ;;  %v673_v14 = vmul.f32 %v672_v10, %v1853_v22  ;;  %v1383_v22 = vld [vmem:[%s2123_s5 + $0x2] sm:$0x1] }
 0x3e8   :  { %1550 = vmatpush3.bf16.msra.mxu1 %v629_v42  ;;  %1551 = vmatprep.mubr.msk.bf16.mxu1 %vm1752_vm0, %v1751_v1 }
 0x3e9   :  { %1555 = vmatprep.subr.bf16.mxu1 %v1751_v1  ;;  %v676_v43 = vpack.c.bf16 %v673_v14, %v673_v14 }
 0x3ea   :  { %v725_v46 = vpop.permute.xlu1 %724 }
 0x3eb   :  { %v681_v45 = vsel %vm581_vm3, %v676_v43, 0  ;;  %v726_v47 = vmul.f32 %v725_v46, %v1865_v30  ;;  %v1385_v30 = vld [vmem:[%s2123_s5 + $0x3] sm:$0x1] }
 0x3ed   :  { %v729_v48 = vpack.c.bf16 %v726_v47, %v726_v47 }
 0x3ee   :  { %v828_v52 = vpop.permute.xlu1 %827 }
 0x3ef   :  { %v734_v49 = vsel %vm581_vm3, %v729_v48, 0  ;;  %v829_v53 = vmul.f32 %v828_v52, %v1886_v40  ;;  %v1389_v40 = vld [vmem:[%s2123_s5 + $0x5] sm:$0x1] }
 0x3f1   :  { %v832_v54 = vpack.c.bf16 %v829_v53, %v829_v53 }
 0x3f2   :  { %v881_v58 = vpop.permute.xlu1 %880 }
 0x3f3   :  { %1552 = vmatmul.mubr.msk.bf16.vlgmr.msra.gmra.mrb[0].mxu1 %vm577_vm4, %v569_v44  ;;  %v837_v57 = vsel %vm581_vm3, %v832_v54, 0  ;;  %v882_v59 = vmul.f32 %v881_v58, %v1838_v6  ;;  %v1391_v6 = vld [vmem:[%s2123_s5 + $0x6] sm:$0x1] }
 0x3f4   :  { %1556 = vmatpush3.bf16.msra.mxu1 %v681_v45  ;;  %1557 = vmatprep.mubr.msk.bf16.mxu1 %vm1752_vm0, %v1751_v1 }
 0x3f5   :  { %1561 = vmatprep.subr.bf16.mxu1 %v1751_v1  ;;  %v885_v60 = vpack.c.bf16 %v882_v59, %v882_v59 }
 0x3f6   :  { %v987_v3 = vpop.permute.xlu1 %986 }
 0x3f7   :  { %v890_v61 = vsel %vm581_vm3, %v885_v60, 0  ;;  %v988_v4 = vmul.f32 %v1918_v56, %v987_v3  ;;  %v1741_v56 = vld [vmem:[%s2122_s6] sm:$0xff]  }
 0x3f9   :  { %v991_v5 = vpack.c.bf16 %v988_v4, %v988_v4 }
 0x3fb   :  { %v996_v7 = vsel %vm581_vm3, %v991_v5, 0 }
 0x3ff   :  { %1558 = vmatmul.mubr.msk.bf16.vlgmr.msra.gmra.mrb[0].mxu1 %vm577_vm4, %v1383_v22 }
 0x400   :  { %1562 = vmatpush3.bf16.msra.mxu1 %v734_v49  ;;  %1563 = vmatprep.mubr.msk.bf16.mxu1 %vm1752_vm0, %v1751_v1 }
 0x401   :  { %1567 = vmatprep.subr.bf16.mxu1 %v1751_v1 }
 0x40b   :  { %1564 = vmatmul.mubr.msk.bf16.vlgmr.msra.gmra.mrb[0].mxu1 %vm577_vm4, %v1385_v30 }
 0x40c   :  { %1568 = vmatpush3.bf16.msra.mxu1 %v784_v51  ;;  %1569 = vmatprep.mubr.msk.bf16.mxu1 %vm1752_vm0, %v1751_v1 }
 0x40d   :  { %1573 = vmatprep.subr.bf16.mxu1 %v1751_v1 }
 0x417   :  { %1570 = vmatmul.mubr.msk.bf16.vlgmr.msra.gmra.mrb[0].mxu1 %vm577_vm4, %v1387_v55 }
 0x418   :  { %1574 = vmatpush3.bf16.msra.mxu1 %v837_v57  ;;  %1575 = vmatprep.mubr.msk.bf16.mxu1 %vm1752_vm0, %v1751_v1 }
 0x419   :  { %1579 = vmatprep.subr.bf16.mxu1 %v1751_v1 }
 0x423   :  { %1576 = vmatmul.mubr.msk.bf16.vlgmr.msra.gmra.mrb[0].mxu1 %vm577_vm4, %v1389_v40 }
 0x424   :  { %1580 = vmatpush3.bf16.msra.mxu1 %v890_v61  ;;  %1581 = vmatprep.mubr.msk.bf16.mxu1 %vm1752_vm0, %v1751_v1 }
 0x425   :  { %1585 = vmatprep.subr.bf16.mxu1 %v1751_v1 }
 0x42f   :  { %1582 = vmatmul.mubr.msk.bf16.vlgmr.msra.gmra.mrb[0].mxu1 %vm577_vm4, %v1391_v6 }
 0x430   :  { %1586 = vmatpush3.bf16.msra.mxu1 %v943_v2  ;;  %1587 = vmatprep.mubr.msk.bf16.mxu1 %vm1752_vm0, %v1751_v1 }
 0x431   :  { %1591 = vmatprep.subr.bf16.mxu1 %v1751_v1 }
 0x43b   :  { %1588 = vmatmul.mubr.msk.bf16.vlgmr.msra.gmra.mrb[0].mxu1 %vm577_vm4, %v1393_v8 }
 0x43c   :  { %1592 = vmatpush3.bf16.msra.mxu1 %v996_v7  ;;  %1593 = vmatprep.mubr.msk.bf16.mxu1 %vm1752_vm0, %v1751_v1 }
 0x43d   :  { %1621 = vmatprep.subr.bf16.mxu1 %v1751_v1 }
 0x447   :  { %1594 = vmatmul.mubr.msk.bf16.vlgmr.msra.gmra.mrb[0].mxu1 %vm577_vm4, %v1395_v9 }
 0x448   :  { %1629 = vmatprep.mubr.msk.bf16.mxu1 %vm1752_vm0, %v1751_v1  ;;  %1622 = vmatpush3.bf16.msra.mxu1 %v1741_v56 }
 0x449   :  { %1623 = vmatprep.subr.bf16.mxu1 %v1751_v1 }
 0x44c   :  { %1624 = vmatpush3.bf16.msra.mxu1 %v1742_v11 }
 0x44d   :  { %1625 = vmatprep.subr.bf16.mxu1 %v1751_v1 }
 0x450   :  { %1626 = vmatpush3.bf16.msra.mxu1 %v1743_v12 }
 0x451   :  { %1627 = vmatprep.subr.bf16.mxu1 %v1751_v1 }
 0x454   :  { %1628 = vmatpush3.bf16.msra.mxu1 %v1744_v13 }
 0x455   :  { %1633 = vmatprep.subr.bf16.mxu1 %v1751_v1 }
 0x51a   :  { %v1032_v15 = vpop.f32.mrb[0].mxu1 }
 0x51b   :  { %v1040_v17 = vpack.c.bf16 %v1032_v15, %v1032_v15  ;;  %v1595_v18 = vpop.f32.mrb[1].mxu1 }
 0x51c   :  { %v1035_v19 = vpop.f32.mrb[2].mxu1 }
 0x51d   :  { %1209 = vrot.lane.b32.xlu0 %v1040_v17, %s1762_s10  ;;  %v1596_v20 = vpop.f32.mrb[3].mxu1  ;;  %1606 = vmatmul.mubr.msk.bf16.vlgmr.msra.gmra.mrb[4].mxu0 %vm1073_vm5, %v1040_v17  ;;  %v1127_v21 = vshrl.u32 %v1040_v17, 16 }
 0x51e   :  { %1610 = vmatpush3.bf16.msra.mxu0 %v1737_v16  ;;  %1617 = vmatprep.mubr.msk.bf16.mxu0 %vm1752_vm0, %v1751_v1 }
 0x51f   :  { %1287 = vrot.lane.b32.xlu1 %v1127_v21, %s1762_s10  ;;  %1611 = vmatprep.subr.bf16.mxu0 %v1751_v1 }
 0x522   :  { %1612 = vmatpush3.bf16.msra.mxu0 %v1738_v23 }
 0x523   :  { %1613 = vmatprep.subr.bf16.mxu0 %v1751_v1 }
 0x526   :  { %1614 = vmatpush3.bf16.msra.mxu0 %v1739_v24 }
 0x527   :  { %1615 = vmatprep.subr.bf16.mxu0 %v1751_v1 }
 0x52a   :  { %1616 = vmatpush3.bf16.msra.mxu0 %v1740_v25 }
 0x52d   :  { %1618 = vmatmul.mubr.msk.bf16.vlgmr.msra.gmra.mrb[4].mxu0 %vm1073_vm5, %v1127_v21 }
 0x58f   :  { %v1210_v27 = vpop.permute.xlu0 %1209 }
 0x590   :  { %1630 = vmatmul.mubr.msk.bf16.vlgmr.msra.gmra.mrb[4].mxu1 %vm1073_vm5, %v1210_v27 }
 0x591   :  { %1634 = vmatpush3.bf16.msra.mxu1 %v1745_v26  ;;  %1641 = vmatprep.mubr.msk.bf16.mxu1 %vm1752_vm0, %v1751_v1  ;;  %v1288_v32 = vpop.permute.xlu1 %1287 }
 0x592   :  { %1635 = vmatprep.subr.bf16.mxu1 %v1751_v1 }
 0x595   :  { %1636 = vmatpush3.bf16.msra.mxu1 %v1746_v28 }
 0x596   :  { %1637 = vmatprep.subr.bf16.mxu1 %v1751_v1 }
 0x599   :  { %1638 = vmatpush3.bf16.msra.mxu1 %v1747_v29 }
 0x59a   :  { %1639 = vmatprep.subr.bf16.mxu1 %v1751_v1  ;;  %v1199_v1 = vld [vmem:[%s2124_s7] sm:$0x1] }
 0x59d   :  { %1640 = vmatpush3.bf16.msra.mxu1 %v1748_v31 }
 0x5a0   :  { %1642 = vmatmul.mubr.msk.bf16.vlgmr.msra.gmra.mrb[4].mxu1 %vm1073_vm5, %v1288_v32 }
 0x600   :  { %v1190_v34 = vpop.f32.mrb[4].mxu0 }
 0x601   :  { %v1645_v35 = vadd.f32 %v1190_v34, %v1039_v33  ;;  %v1619_v36 = vpop.f32.mrb[5].mxu0 }
 0x602   :  { %v1193_v37 = vpop.f32.mrb[6].mxu0 }
 0x603   :  { %1198 = vst.msk [vmem:[%s2125_s8] sm:$0x1] %vm1197_vm6, %v1645_v35  ;;  %v1620_v38 = vpop.f32.mrb[7].mxu0 }
 0x673   :  { %v1350_v39 = vpop.f32.mrb[4].mxu1 }
 0x674   :  { %v1646_v41 = vadd.f32 %v1350_v39, %v1199_v1  ;;  %v1643_v42 = vpop.f32.mrb[5].mxu1 }
 0x675   :  { %v1353_v10 = vpop.f32.mrb[6].mxu1 }
 0x676   :  { %1357 = vst.msk [vmem:[%s2125_s8 + $0x1] sm:$0x1] %vm1197_vm6, %v1646_v41  ;;  %v1644_v14 = vpop.f32.mrb[7].mxu1 }

</bundles_post_ra>
